<compile_context>
chip_gen: v5e
topology: v5e:2x2
jax: 0.10.0
libtpu: 0.0.40
codegen_flags: <defaults>
</compile_context>

<pallas_src>
import jax
import jax.numpy as jnp
from jax.experimental import pallas as pl
from jax.experimental.pallas import tpu as pltpu

EMBED_DIM = 100  # matches nn.Embedding(input_size, 100)


def _round_up(x, m):
    return ((x + m - 1) // m) * m


def pad_embedding_table(table):
    """Pad (vocab, dim) -> (round128(vocab), round128(dim)). Do this once at init."""
    vocab, dim = table.shape
    v_pad, d_pad = _round_up(vocab, 128), _round_up(dim, 128)
    return jnp.zeros((v_pad, d_pad), table.dtype).at[:vocab, :dim].set(table)


def _make_embedding_kernel(vocab, dim):
    def kernel(idx_ref, table_ref, out_ref):
        # idx_ref:   (TT, 1)         int32 token indices for this tile
        # table_ref: (V_pad, D_pad)  padded table, constant block index -> VMEM resident
        # out_ref:   (TT, dim)       gathered rows; dim == full last dim -> masked vst
        idx = jnp.clip(idx_ref[...], 0, vocab - 1)          # in-kernel OOB clamp (VPU, free)
        tt = idx.shape[0]
        v_pad = table_ref.shape[0]
        vocab_iota = jax.lax.broadcasted_iota(jnp.int32, (tt, v_pad), 1)
        onehot = (vocab_iota == idx).astype(table_ref.dtype)  # exact 0.0 / 1.0
        # HIGHEST precision -> multi-pass f32 MXU matmul; with a one-hot LHS the result
        # is a bit-exact copy of the selected table rows.
        # (If the f32 matmul ever binds on v5e, a bf16 two-pass split of the table is an
        #  exact alternative; on v6e/v7x this kernel is output-write bound anyway.)
        gathered = jnp.dot(onehot, table_ref[...],
                           preferred_element_type=jnp.float32,
                           precision=jax.lax.Precision.HIGHEST)
        out_ref[...] = gathered[:, :dim].astype(out_ref.dtype)
    return kernel


def embedding_forward(indices, table, *, token_tile=2048, min_pallas_tokens=2048,
                      force_pallas=False, padded_table=None):
    """Embedding lookup: indices (any int shape) -> indices.shape + (dim,).

    Out-of-range indices are clamped to [0, vocab) (PyTorch would raise).
    Pass `padded_table=pad_embedding_table(table)` to hoist padding out of the call path.
    On v7x, `token_tile` can be raised to ~8192 and still fit VMEM comfortably.
    """
    orig_shape = indices.shape
    vocab, dim = table.shape
    flat_idx = indices.reshape(-1).astype(jnp.int32)
    n_tok = flat_idx.shape[0]

    # Fast path: for small token counts the pad/launch/slice overhead dwarfs the kernel.
    if n_tok < min_pallas_tokens and not force_pallas:
        safe = jnp.clip(flat_idx, 0, vocab - 1)
        return jnp.take(table, safe, axis=0).reshape(orig_shape + (dim,))

    if padded_table is None:
        padded_table = pad_embedding_table(table)
    v_pad, d_pad = padded_table.shape

    # Tokens per grid step (multiple of 8). VMEM per step ~= 2*(tt*dim*4) output buffers
    # + 2*(tt*128*4) lane-padded idx buffers + 2*(v_pad*d_pad*4) table — ~3.7 MiB at tt=2048.
    tt = min(token_tile, _round_up(n_tok, 8))
    n_pad = _round_up(n_tok, tt)

    if n_pad == n_tok:
        idx_p = flat_idx.reshape(n_pad, 1)
    else:
        idx_p = jnp.zeros((n_pad, 1), jnp.int32).at[:n_tok, 0].set(flat_idx)

    out = pl.pallas_call(
        _make_embedding_kernel(vocab, dim),
        out_shape=jax.ShapeDtypeStruct((n_pad, dim), table.dtype),
        grid_spec=pltpu.PrefetchScalarGridSpec(
            num_scalar_prefetch=0,
            grid=(n_pad // tt,),
            in_specs=[
                # Per-tile index slice.
                pl.BlockSpec((tt, 1), lambda i: (i, 0)),
                # Whole padded table, same block every step (effectively VMEM-resident).
                pl.BlockSpec((v_pad, d_pad), lambda i: (0, 0)),
            ],
            # Output written directly at width `dim` (== full last dim): no wrapper slice.
            out_specs=pl.BlockSpec((tt, dim), lambda i: (i, 0)),
        ),
        compiler_params=pltpu.CompilerParams(
            dimension_semantics=("parallel",),
        ),
    )(idx_p, padded_table)

    if n_pad != n_tok:
        out = out[:n_tok]
    return out.reshape(orig_shape + (dim,))


if __name__ == "__main__":
    key = jax.random.PRNGKey(0)
    k_w, k_i, k_j = jax.random.split(key, 3)

    input_size = 50                                   # vocab size
    # nn.Embedding default init: weight ~ N(0, 1)
    table = jax.random.normal(k_w, (input_size, EMBED_DIM), dtype=jnp.float32)
    table_p = pad_embedding_table(table)              # pad once, reuse across calls

    # 1) Spec-sized input (batch=2, seq=8), forced through the Pallas kernel.
    idx_small = jax.random.randint(k_i, (2, 8), 0, input_size, dtype=jnp.int32)
    out_small = embedding_forward(idx_small, table, force_pallas=True, padded_table=table_p)
    out_small = jax.block_until_ready(out_small)
    ref_small = table[idx_small]
    assert out_small.shape == (2, 8, EMBED_DIM), out_small.shape
    assert jnp.array_equal(out_small, ref_small), "Pallas gather not bit-exact (small)"

    # 2) Larger input exercising the token-tiled path naturally (4096 tokens, grid=2).
    idx_big = jax.random.randint(k_j, (4, 1024), 0, input_size, dtype=jnp.int32)
    out_big = jax.block_until_ready(
        embedding_forward(idx_big, table, padded_table=table_p))
    ref_big = table[idx_big]
    assert out_big.shape == (4, 1024, EMBED_DIM), out_big.shape
    assert jnp.array_equal(out_big, ref_big), "Pallas gather not bit-exact (big)"

    # 3) Small-input fast path (bypasses Pallas).
    out_fast = jax.block_until_ready(embedding_forward(idx_small, table))
    assert jnp.array_equal(out_fast, ref_small), "fast path mismatch"

    print("KERNEL_OK")
</pallas_src>

<mosaic_0001>
module attributes {stable_mosaic.version = 11 : i64} {
  func.func @kernel(%arg0: i32, %arg1: memref<16x1xi32, #tpu.memory_space<vmem>>, %arg2: memref<128x128xf32, #tpu.memory_space<vmem>>, %arg3: memref<16x100xf32, #tpu.memory_space<vmem>>) attributes {dimension_semantics = [#tpu.dimension_semantics<parallel>], iteration_bounds = array<i64: 1>, scalar_prefetch = 0 : i64, scratch_operands = 0 : i64, tpu.core_type = #tpu.core_type<tc>, window_params = [{transform_indices = @transform_0, window_bounds = array<i64: 16, 1>}, {pipeline_mode = #tpu.pipeline_mode<synchronous>, transform_indices = @transform_1, window_bounds = array<i64: 128, 128>}, {transform_indices = @transform_2, window_bounds = array<i64: 16, 100>}]} {
    %c0 = arith.constant 0 : index
    %c0_0 = arith.constant 0 : index
    %0 = vector.load %arg1[%c0, %c0_0] : memref<16x1xi32, #tpu.memory_space<vmem>>, vector<16x1xi32>
    %c0_i32 = arith.constant 0 : i32
    %c49_i32 = arith.constant 49 : i32
    %1 = vector.broadcast %c0_i32 : i32 to vector<16x1xi32>
    %2 = arith.maxsi %1, %0 : vector<16x1xi32>
    %3 = vector.broadcast %c49_i32 : i32 to vector<16x1xi32>
    %4 = arith.minsi %3, %2 : vector<16x1xi32>
    %5 = tpu.iota {dimensions = array<i32: 1>} : vector<16x128xi32>
    %6 = vector.broadcast %4 : vector<16x1xi32> to vector<16x128xi32>
    %7 = arith.cmpi eq, %5, %6 : vector<16x128xi32>
    %8 = arith.extui %7 : vector<16x128xi1> to vector<16x128xi32>
    %9 = arith.sitofp %8 : vector<16x128xi32> to vector<16x128xf32>
    %c0_1 = arith.constant 0 : index
    %c0_2 = arith.constant 0 : index
    %10 = vector.load %arg2[%c0_1, %c0_2] : memref<128x128xf32, #tpu.memory_space<vmem>>, vector<128x128xf32>
    %cst = arith.constant dense<0.000000e+00> : vector<16x128xf32>
    %11 = tpu.matmul %9, %10, %cst {dimension_numbers = #tpu.dot_dimension_numbers<[1], [0], [0], [1], [0, 0, 1, 1], [], []>, precision = #tpu.contract_precision<fp32>} : vector<16x128xf32>, vector<128x128xf32>, vector<16x128xf32> -> vector<16x128xf32>
    %12 = vector.extract_strided_slice %11 {offsets = [0, 0], sizes = [16, 100], strides = [1, 1]} : vector<16x128xf32> to vector<16x100xf32>
    %c0_3 = arith.constant 0 : index
    %c0_4 = arith.constant 0 : index
    %13 = vector.load %arg3[%c0_3, %c0_4] : memref<16x100xf32, #tpu.memory_space<vmem>>, vector<16x100xf32>
    tpu.vector_store %arg3[%c0_3, %c0_4], %12 {strides = array<i32>} : memref<16x100xf32, #tpu.memory_space<vmem>>, vector<16x100xf32>,
    return
  }
  func.func @transform_0(%arg0: i32) -> (i32, i32) {
    %c0_i32 = arith.constant 0 : i32
    %c0_i32_0 = arith.constant 0 : i32
    return %arg0, %c0_i32 : i32, i32
  }
  func.func @transform_1(%arg0: i32) -> (i32, i32) {
    %c0_i32 = arith.constant 0 : i32
    %c0_i32_0 = arith.constant 0 : i32
    %c0_i32_1 = arith.constant 0 : i32
    return %c0_i32, %c0_i32_0 : i32, i32
  }
  func.func @transform_2(%arg0: i32) -> (i32, i32) {
    %c0_i32 = arith.constant 0 : i32
    %c0_i32_0 = arith.constant 0 : i32
    return %arg0, %c0_i32 : i32, i32
  }
}

</mosaic_0001>

<bundles_post_ra>
// kernel: tpu_custom_call.1
= control target key start
LH: loop header
LB: loop body
LE: loop exit
PB: predicated region body
PF: predicated region fallthrough
CT: control target
= control target key end

     0   :  { %7 = vsyncpa [#allocation3], 0  ;;  %s799_s0 = inlined_call_operand.vmem [shape: s32[16,1], index: 0, kind: input, shape index: {}]   ;;  %s800_s1 = inlined_call_operand.hbm [shape: f32[128,128], index: 1, kind: input, shape index: {}]   ;;  %s801_s2 = inlined_call_operand.hbm [shape: f32[16,100], index: 2, kind: output, shape index: {}]  }
   0x1   :  { %8 = vsyncpa [#allocation4], 0  ;;  %s15_s11 = sshll.u32 %s800_s1, 4  ;;  %s562_s12 = smov [#allocation2]   ;;  %s16_s11 = int_to_ptr.hbm [resolvable:$true] %s15_s11 }
   0x2   :  { %s17_s13 = sshll.u32 %s562_s12, 4  ;;  %s563_s14 = smov 128   ;;  %s18_s13 = int_to_ptr.vmem [resolvable:$true] %s17_s13 }
   0x3   :  { %s564_s15 = smov 8  }
   0x4   :  { %23 = dma.hbm_to_vmem [thread:$0]  %s16_s11, 2048, %s18_s13, [#allocation3], %s563_s14, %s563_s14, %s564_s15  }
   0x5   :  { %558 = dma.done.wait [#allocation3], 2048  }
   0x6   :  { %559 = vsyncadd [#allocation3], 4294965248  ;;  %v565_v0 = vmov 0   ;;  %v28_v1 = vld [vmem:[%s799_s0] sm:$0xff]  ;;  %v29_v2 = vld [vmem:[%s799_s0 + $0x8] sm:$0xff]  ;;  %s568_s0 = smov [#allocation5]  }
   0x7   :  { %509 = vset.pattern.permute.xlu0 %v565_v0  ;;  %v67_v3 = vld [vmem:[#allocation2 + $0x78] sm:$0xff]  ;;  %vm30_vm0 = vcmp.gt.s32.totalorder %v28_v1, 0  ;;  %vm32_vm1 = vcmp.gt.s32.totalorder %v29_v2, 0  ;;  %v66_v5 = vld [vmem:[#allocation2 + $0x70] sm:$0xff]  ;;  %v65_v6 = vld [vmem:[#allocation2 + $0x68] sm:$0xff]  ;;  %s447_s19 = sshll.u32 %s568_s0, 4  ;;  %s448_s19 = int_to_ptr.vmem [resolvable:$true] %s447_s19 }
   0x8   :  { %v596_v4 = vand.u32 4294901760, %v67_v3  ;;  %v64_v7 = vld [vmem:[#allocation2 + $0x60] sm:$0xff]  ;;  %v31_v8 = vsel %vm30_vm0, %v28_v1, 0  ;;  %v33_v9 = vsel %vm32_vm1, %v29_v2, 0  ;;  %v598_v10 = vand.u32 4294901760, %v66_v5  ;;  %v63_v12 = vld [vmem:[#allocation2 + $0x58] sm:$0xff] }
   0x9   :  { %v600_v11 = vand.u32 4294901760, %v65_v6  ;;  %v62_v13 = vld [vmem:[#allocation2 + $0x50] sm:$0xff]  ;;  %vm34_vm2 = vcmp.lt.s32.totalorder %v31_v8, 49  ;;  %v604_v15 = vand.u32 4294901760, %v64_v7  ;;  %v61_v16 = vld [vmem:[#allocation2 + $0x48] sm:$0xff]  ;;  %v60_v17 = vld [vmem:[#allocation2 + $0x40] sm:$0xff] }
   0xa   :  { %v118_v14 = vsub.f32 %v67_v3, %v596_v4  ;;  %282 = vmatpush.msra.mxu3 %v596_v4  ;;  %69 = vmatpush.msra.mxu0 %v596_v4  ;;  %v35_v18 = vsel %vm34_vm2, %v31_v8, 49  ;;  %vm36_vm3 = vcmp.lt.s32.totalorder %v33_v9, 49  ;;  %v124_v19 = vsub.f32 %v66_v5, %v598_v10  ;;  %v59_v25 = vld [vmem:[#allocation2 + $0x38] sm:$0xff]  ;;  %v58_v42 = vld [vmem:[#allocation2 + $0x30] sm:$0xff]  ;;  %v57_v43 = vld [vmem:[#allocation2 + $0x28] sm:$0xff]  ;;  %s449_s22 = sshll.u32 %s801_s2, 4  ;;  %s450_s22 = int_to_ptr.hbm [resolvable:$true] %s449_s22 }
   0xb   :  { %v130_v20 = vsub.f32 %v65_v6, %v600_v11  ;;  %41 = vperm.xlu0 %509, %v35_v18   ;;  %v136_v22 = vsub.f32 %v64_v7, %v604_v15  ;;  %v612_v23 = vand.u32 4294901760, %v63_v12  ;;  %v614_v24 = vand.u32 4294901760, %v62_v13  ;;  %v56_v48 = vld [vmem:[#allocation2 + $0x20] sm:$0xff]  ;;  %v55_v55 = vld [vmem:[#allocation2 + $0x18] sm:$0xff]  ;;  %v54_v61 = vld [vmem:[#allocation2 + $0x10] sm:$0xff] }
   0xc   :  { %v609_v21 = vand.u32 4294901760, %v118_v14  ;;  %224 = vmatpush.msra.mxu2 %v118_v14  ;;  %v616_v26 = vand.u32 4294901760, %v124_v19  ;;  %284 = vmatpush.msra.mxu3 %v598_v10  ;;  %v622_v28 = vand.u32 4294901760, %v61_v16  ;;  %v624_v29 = vand.u32 4294901760, %v60_v17  ;;  %v53_v3 = vld [vmem:[#allocation2 + $0x8] sm:$0xff] }
   0xd   :  { %v618_v27 = vand.u32 4294901760, %v130_v20  ;;  %71 = vmatpush.msra.mxu0 %v598_v10  ;;  %v627_v31 = vand.u32 4294901760, %v136_v22  ;;  %v142_v32 = vsub.f32 %v63_v12, %v612_v23  ;;  %v148_v33 = vsub.f32 %v62_v13, %v614_v24  ;;  %v52_v12 = vld [vmem:[#allocation2] sm:$0xff] }
   0xe   :  { %v120_v30 = vsub.f32 %v118_v14, %v609_v21  ;;  %227 = vmatpush.msra.mxu2 %v124_v19  ;;  %v126_v34 = vsub.f32 %v124_v19, %v616_v26  ;;  %286 = vmatpush.msra.mxu3 %v600_v11  ;;  %v154_v36 = vsub.f32 %v61_v16, %v622_v28  ;;  %v636_v37 = vand.u32 4294901760, %v59_v25 }
   0xf   :  { %v132_v35 = vsub.f32 %v130_v20, %v618_v27  ;;  %73 = vmatpush.msra.mxu0 %v600_v11  ;;  %v138_v39 = vsub.f32 %v136_v22, %v627_v31  ;;  %v639_v40 = vand.u32 4294901760, %v142_v32  ;;  %v641_v41 = vand.u32 4294901760, %v148_v33 }
  0x10   :  { %v121_v38 = vand.u32 4294901760, %v120_v30  ;;  %230 = vmatpush.msra.mxu2 %v130_v20  ;;  %v37_v44 = vsel %vm36_vm3, %v33_v9, 49  ;;  %v127_v45 = vand.u32 4294901760, %v126_v34  ;;  %288 = vmatpush.msra.mxu3 %v604_v15  ;;  %v645_v46 = vand.u32 4294901760, %v154_v36 }
  0x11   :  { %v160_v47 = vsub.f32 %v60_v17, %v624_v29  ;;  %75 = vmatpush.msra.mxu0 %v604_v15  ;;  %v133_v49 = vand.u32 4294901760, %v132_v35  ;;  %v144_v50 = vsub.f32 %v142_v32, %v639_v40  ;;  %v166_v51 = vsub.f32 %v59_v25, %v636_v37 }
  0x12   :  { %122 = vmatpush.msra.mxu1 %v121_v38  ;;  %233 = vmatpush.msra.mxu2 %v136_v22  ;;  %v655_v53 = vand.u32 4294901760, %v58_v42  ;;  %v657_v54 = vand.u32 4294901760, %v57_v43  ;;  %v139_v56 = vand.u32 4294901760, %v138_v39  ;;  %v150_v57 = vsub.f32 %v148_v33, %v641_v41 }
  0x13   :  { %290 = vmatpush.msra.mxu3 %v612_v23  ;;  %v652_v52 = vand.u32 4294901760, %v160_v47  ;;  %77 = vmatpush.msra.mxu0 %v612_v23  ;;  %v660_v58 = vand.u32 4294901760, %v56_v48  ;;  %v156_v59 = vsub.f32 %v154_v36, %v645_v46  ;;  %v145_v62 = vand.u32 4294901760, %v144_v50 }
  0x14   :  { %44 = vperm.xlu0 %509, %v37_v44   ;;  %128 = vmatpush.msra.mxu1 %v127_v45  ;;  %v172_v60 = vsub.f32 %v58_v42, %v655_v53  ;;  %v665_v63 = vand.u32 4294901760, %v166_v51  ;;  %v178_v0 = vsub.f32 %v57_v43, %v657_v54  ;;  %v669_v1 = vand.u32 4294901760, %v55_v55 }
  0x15   :  { %236 = vmatpush.msra.mxu2 %v142_v32  ;;  %292 = vmatpush.msra.mxu3 %v614_v24  ;;  %v162_v2 = vsub.f32 %v160_v47, %v652_v52  ;;  %v151_v5 = vand.u32 4294901760, %v150_v57  ;;  %v184_v7 = vsub.f32 %v56_v48, %v660_v58  ;;  %v677_v8 = vand.u32 4294901760, %v54_v61 }
  0x16   :  { %134 = vmatpush.msra.mxu1 %v133_v49  ;;  %79 = vmatpush.msra.mxu0 %v614_v24  ;;  %v673_v6 = vand.u32 4294901760, %v172_v60  ;;  %v157_v9 = vand.u32 4294901760, %v156_v59  ;;  %v168_v13 = vsub.f32 %v166_v51, %v665_v63  ;;  %v681_v14 = vand.u32 4294901760, %v178_v0 }
  0x17   :  { %239 = vmatpush.msra.mxu2 %v148_v33  ;;  %294 = vmatpush.msra.mxu3 %v622_v28  ;;  %v190_v16 = vsub.f32 %v55_v55, %v669_v1  ;;  %v685_v17 = vand.u32 4294901760, %v53_v3  ;;  %v163_v18 = vand.u32 4294901760, %v162_v2  ;;  %v689_v20 = vand.u32 4294901760, %v184_v7 }
  0x18   :  { %140 = vmatpush.msra.mxu1 %v139_v56  ;;  %81 = vmatpush.msra.mxu0 %v622_v28  ;;  %v174_v19 = vsub.f32 %v172_v60, %v673_v6  ;;  %v196_v22 = vsub.f32 %v54_v61, %v677_v8  ;;  %v693_v25 = vand.u32 4294901760, %v52_v12  ;;  %v169_v30 = vand.u32 4294901760, %v168_v13 }
  0x19   :  { %242 = vmatpush.msra.mxu2 %v154_v36  ;;  %296 = vmatpush.msra.mxu3 %v624_v29  ;;  %v180_v32 = vsub.f32 %v178_v0, %v681_v14  ;;  %v697_v33 = vand.u32 4294901760, %v190_v16  ;;  %v202_v34 = vsub.f32 %v53_v3, %v685_v17  ;;  %v186_v36 = vsub.f32 %v184_v7, %v689_v20 }
  0x1a   :  { %146 = vmatpush.msra.mxu1 %v145_v62  ;;  %83 = vmatpush.msra.mxu0 %v624_v29  ;;  %v175_v35 = vand.u32 4294901760, %v174_v19  ;;  %v703_v38 = vand.u32 4294901760, %v196_v22  ;;  %v208_v39 = vsub.f32 %v52_v12, %v693_v25  ;;  %vm440_vm6 = vcmask 818176  }
  0x1b   :  { %245 = vmatpush.msra.mxu2 %v160_v47  ;;  %298 = vmatpush.msra.mxu3 %v636_v37  ;;  %v181_v42 = vand.u32 4294901760, %v180_v32  ;;  %v192_v43 = vsub.f32 %v190_v16, %v697_v33  ;;  %v709_v44 = vand.u32 4294901760, %v202_v34  ;;  %v187_v45 = vand.u32 4294901760, %v186_v36 }
  0x1c   :  { %152 = vmatpush.msra.mxu1 %v151_v5  ;;  %85 = vmatpush.msra.mxu0 %v636_v37  ;;  %v198_v47 = vsub.f32 %v196_v22, %v703_v38  ;;  %v714_v48 = vand.u32 4294901760, %v208_v39 }
  0x1d   :  { %248 = vmatpush.msra.mxu2 %v166_v51  ;;  %300 = vmatpush.msra.mxu3 %v655_v53  ;;  %v193_v49 = vand.u32 4294901760, %v192_v43  ;;  %v204_v50 = vsub.f32 %v202_v34, %v709_v44 }
  0x1e   :  { %158 = vmatpush.msra.mxu1 %v157_v9  ;;  %87 = vmatpush.msra.mxu0 %v655_v53  ;;  %v199_v51 = vand.u32 4294901760, %v198_v47  ;;  %v210_v55 = vsub.f32 %v208_v39, %v714_v48 }
  0x1f   :  { %251 = vmatpush.msra.mxu2 %v172_v60  ;;  %302 = vmatpush.msra.mxu3 %v657_v54  ;;  %v205_v56 = vand.u32 4294901760, %v204_v50 }
  0x20   :  { %164 = vmatpush.msra.mxu1 %v163_v18  ;;  %89 = vmatpush.msra.mxu0 %v657_v54  ;;  %v211_v57 = vand.u32 4294901760, %v210_v55 }
  0x21   :  { %254 = vmatpush.msra.mxu2 %v178_v0  ;;  %304 = vmatpush.msra.mxu3 %v660_v58 }
  0x22   :  { %170 = vmatpush.msra.mxu1 %v169_v30  ;;  %91 = vmatpush.msra.mxu0 %v660_v58 }
  0x23   :  { %257 = vmatpush.msra.mxu2 %v184_v7  ;;  %306 = vmatpush.msra.mxu3 %v669_v1 }
  0x24   :  { %176 = vmatpush.msra.mxu1 %v175_v35  ;;  %93 = vmatpush.msra.mxu0 %v669_v1 }
  0x25   :  { %260 = vmatpush.msra.mxu2 %v190_v16  ;;  %308 = vmatpush.msra.mxu3 %v677_v8 }
  0x26   :  { %182 = vmatpush.msra.mxu1 %v181_v42  ;;  %95 = vmatpush.msra.mxu0 %v677_v8 }
  0x27   :  { %263 = vmatpush.msra.mxu2 %v196_v22  ;;  %310 = vmatpush.msra.mxu3 %v685_v17 }
  0x28   :  { %188 = vmatpush.msra.mxu1 %v187_v45  ;;  %97 = vmatpush.msra.mxu0 %v685_v17 }
  0x29   :  { %266 = vmatpush.msra.mxu2 %v202_v34  ;;  %312 = vmatpush.msra.mxu3 %v693_v25 }
  0x2a   :  { %194 = vmatpush.msra.mxu1 %v193_v49  ;;  %99 = vmatpush.msra.mxu0 %v693_v25 }
  0x2b   :  { %486 = vmatpush.msrb.mxu3 %v596_v4  ;;  %269 = vmatpush.msra.mxu2 %v208_v39 }
  0x2c   :  { %200 = vmatpush.msra.mxu1 %v199_v51  ;;  %329 = vmatpush.msrb.mxu0 %v609_v21 }
  0x2d   :  { %470 = vmatpush.msrb.mxu2 %v609_v21  ;;  %487 = vmatpush.msrb.mxu3 %v598_v10  ;;  %v567_v21 = vmov 0.0  }
  0x2e   :  { %206 = vmatpush.msra.mxu1 %v205_v56  ;;  %333 = vmatpush.msrb.mxu0 %v616_v26 }
  0x2f   :  { %471 = vmatpush.msrb.mxu2 %v616_v26  ;;  %488 = vmatpush.msrb.mxu3 %v600_v11 }
  0x30   :  { %212 = vmatpush.msra.mxu1 %v211_v57  ;;  %337 = vmatpush.msrb.mxu0 %v618_v27 }
  0x31   :  { %472 = vmatpush.msrb.mxu2 %v618_v27  ;;  %489 = vmatpush.msrb.mxu3 %v604_v15 }
  0x32   :  { %400 = vmatpush.msrb.mxu1 %v596_v4  ;;  %341 = vmatpush.msrb.mxu0 %v627_v31  ;;  %v38_v4 = vlaneseq }
  0x33   :  { %473 = vmatpush.msrb.mxu2 %v627_v31  ;;  %490 = vmatpush.msrb.mxu3 %v612_v23 }
  0x34   :  { %402 = vmatpush.msrb.mxu1 %v598_v10  ;;  %345 = vmatpush.msrb.mxu0 %v639_v40  ;;  %v39_v10 = vand.u32 127, %v38_v4 }
  0x35   :  { %474 = vmatpush.msrb.mxu2 %v639_v40  ;;  %491 = vmatpush.msrb.mxu3 %v614_v24 }
  0x36   :  { %404 = vmatpush.msrb.mxu1 %v600_v11  ;;  %349 = vmatpush.msrb.mxu0 %v641_v41 }
  0x37   :  { %475 = vmatpush.msrb.mxu2 %v641_v41  ;;  %492 = vmatpush.msrb.mxu3 %v622_v28 }
  0x38   :  { %406 = vmatpush.msrb.mxu1 %v604_v15  ;;  %353 = vmatpush.msrb.mxu0 %v645_v46  ;;  %v566_v15 = vmov 1.0  }
  0x39   :  { %476 = vmatpush.msrb.mxu2 %v645_v46  ;;  %493 = vmatpush.msrb.mxu3 %v624_v29 }
  0x3a   :  { %408 = vmatpush.msrb.mxu1 %v612_v23  ;;  %357 = vmatpush.msrb.mxu0 %v652_v52 }
  0x3b   :  { %477 = vmatpush.msrb.mxu2 %v652_v52  ;;  %494 = vmatpush.msrb.mxu3 %v636_v37 }
  0x3c   :  { %410 = vmatpush.msrb.mxu1 %v614_v24  ;;  %361 = vmatpush.msrb.mxu0 %v665_v63 }
  0x3d   :  { %478 = vmatpush.msrb.mxu2 %v665_v63  ;;  %495 = vmatpush.msrb.mxu3 %v655_v53 }
  0x3e   :  { %412 = vmatpush.msrb.mxu1 %v622_v28  ;;  %365 = vmatpush.msrb.mxu0 %v673_v6 }
  0x3f   :  { %479 = vmatpush.msrb.mxu2 %v673_v6  ;;  %496 = vmatpush.msrb.mxu3 %v657_v54 }
  0x40   :  { %414 = vmatpush.msrb.mxu1 %v624_v29  ;;  %369 = vmatpush.msrb.mxu0 %v681_v14 }
  0x41   :  { %480 = vmatpush.msrb.mxu2 %v681_v14  ;;  %497 = vmatpush.msrb.mxu3 %v660_v58 }
  0x42   :  { %416 = vmatpush.msrb.mxu1 %v636_v37  ;;  %373 = vmatpush.msrb.mxu0 %v689_v20 }
  0x43   :  { %481 = vmatpush.msrb.mxu2 %v689_v20  ;;  %498 = vmatpush.msrb.mxu3 %v669_v1 }
  0x44   :  { %418 = vmatpush.msrb.mxu1 %v655_v53  ;;  %377 = vmatpush.msrb.mxu0 %v697_v33 }
  0x45   :  { %482 = vmatpush.msrb.mxu2 %v697_v33  ;;  %499 = vmatpush.msrb.mxu3 %v677_v8 }
  0x46   :  { %420 = vmatpush.msrb.mxu1 %v657_v54  ;;  %381 = vmatpush.msrb.mxu0 %v703_v38 }
  0x47   :  { %483 = vmatpush.msrb.mxu2 %v703_v38  ;;  %500 = vmatpush.msrb.mxu3 %v685_v17 }
  0x48   :  { %422 = vmatpush.msrb.mxu1 %v660_v58  ;;  %385 = vmatpush.msrb.mxu0 %v709_v44 }
  0x49   :  { %484 = vmatpush.msrb.mxu2 %v709_v44  ;;  %501 = vmatpush.msrb.mxu3 %v693_v25 }
  0x4a   :  { %424 = vmatpush.msrb.mxu1 %v669_v1  ;;  %389 = vmatpush.msrb.mxu0 %v714_v48 }
  0x4b   :  { %485 = vmatpush.msrb.mxu2 %v714_v48 }
  0x4c   :  { %426 = vmatpush.msrb.mxu1 %v677_v8 }
  0x4e   :  { %428 = vmatpush.msrb.mxu1 %v685_v17 }
  0x50   :  { %430 = vmatpush.msrb.mxu1 %v693_v25 }
  0x7d   :  { %v42_v11 = vpop.permute.xlu0 %41 }
  0x7e   :  { %vm46_vm4 = vcmp.eq.s32.totalorder %v39_v10, %v42_v11 }
  0x7f   :  { %464 = vmatmul.msk.f32.vlgmr.msra.gmra.mxu1 %vm46_vm4, %v566_v15  ;;  %v462_v23 = vsel %vm46_vm4, 1.0, %v567_v21 }
  0x80   :  { %v101_v24 = vsub.f32 %v462_v23, %v462_v23 }
  0x82   :  { %272 = vmatmul.f32.vlgmr.msra.gmra.mxu2 %v101_v24  ;;  %v102_v26 = vand.u32 4294901760, %v101_v24 }
  0x84   :  { %316 = vmatmul.f32.vlgmr.msra.gmra.mxu3 %v102_v26  ;;  %v103_v27 = vsub.f32 %v101_v24, %v102_v26 }
  0x86   :  { %v45_v28 = vpop.permute.xlu0 %44  ;;  %v104_v29 = vand.u32 4294901760, %v103_v27 }
  0x87   :  { %vm47_vm5 = vcmp.eq.s32.totalorder %v39_v10, %v45_v28 }
  0x88   :  { %465 = vmatmul.msk.f32.gmra.mxu1 %vm47_vm5, %v566_v15  ;;  %v463_v31 = vsel %vm47_vm5, 1.0, %v567_v21  ;;  %105 = vmatmul.f32.vlgmr.msra.gmra.mxu0 %v104_v29 }
  0x89   :  { %v109_v37 = vsub.f32 %v463_v31, %v463_v31 }
  0x8b   :  { %277 = vmatmul.f32.gmra.mxu2 %v109_v37  ;;  %v110_v40 = vand.u32 4294901760, %v109_v37 }
  0x8d   :  { %322 = vmatmul.f32.gmra.mxu3 %v110_v40  ;;  %v111_v41 = vsub.f32 %v109_v37, %v110_v40 }
  0x8f   :  { %v112_v46 = vand.u32 4294901760, %v111_v41 }
  0x90   :  { %468 = vmatmul.msk.f32.vlgmr.msrb.gmra.mxu1 %vm46_vm4, %v566_v15 }
  0x91   :  { %113 = vmatmul.f32.gmra.mxu0 %v112_v46 }
  0x93   :  { %467 = vmatmul.msk.f32.vlgmr.msrb.gmra.mxu2 %vm47_vm5, %v566_v15 }
  0x95   :  { %469 = vmatmul.msk.f32.vlgmr.msrb.gmra.mxu3 %vm47_vm5, %v566_v15 }
  0x99   :  { %466 = vmatmul.msk.f32.vlgmr.msrb.gmra.mxu0 %vm46_vm4, %v566_v15 }
  0xfc   :  { %v215_v52 = vpop.f32.mrf.mxu1 }
 0x105   :  { %v106_v53 = vpop.f32.mrf.mxu0  ;;  %v273_v54 = vpop.f32.mrf.mxu2 }
 0x106   :  { %v219_v59 = vpop.f32.mrf.mxu1  ;;  %v216_v60 = vadd.f32 %v215_v52, %v106_v53 }
 0x107   :  { %v317_v58 = vpop.f32.mrf.mxu3 }
 0x108   :  { %v274_v1 = vadd.f32 %v273_v54, %v216_v60 }
 0x10a   :  { %v318_v3 = vadd.f32 %v317_v58, %v274_v1 }
 0x10e   :  { %v114_v61 = vpop.f32.mrf.mxu0  ;;  %v278_v62 = vpop.f32.mrf.mxu2 }
 0x10f   :  { %v220_v63 = vadd.f32 %v219_v59, %v114_v61  ;;  %v433_v12 = vpop.f32.mrf.mxu1 }
 0x110   :  { %v323_v0 = vpop.f32.mrf.mxu3 }
 0x111   :  { %v279_v2 = vadd.f32 %v278_v62, %v220_v63 }
 0x113   :  { %v324_v5 = vadd.f32 %v323_v0, %v279_v2 }
 0x116   :  { %v392_v6 = vpop.f32.mrf.mxu0  ;;  %v396_v7 = vpop.f32.mrf.mxu2 }
 0x117   :  { %v393_v8 = vadd.f32 %v392_v6, %v318_v3  ;;  %v397_v9 = vadd.f32 %v396_v7, %v324_v5 }
 0x118   :  { %v437_v13 = vpop.f32.mrf.mxu3 }
 0x119   :  { %v434_v14 = vadd.f32 %v433_v12, %v393_v8  ;;  %v438_v16 = vadd.f32 %v437_v13, %v397_v9 }
 0x11b   :  { %442 = vst.msk [vmem:[#allocation5 + $0x8] sm:$0xff] %vm440_vm6, %v438_v16 }
 0x11c   :  { %441 = vst.msk [vmem:[#allocation5] sm:$0xff] %vm440_vm6, %v434_v14 }
 0x11d   :  { %455 = dma.vmem_to_hbm [thread:$0]  %s448_s19, 256, %s450_s22, [#allocation4], %s563_s14, %s563_s14, %s564_s15  }
 0x11e   :  { %560 = dma.done.wait [#allocation4], 256  }
 0x11f   :  { %561 = vsyncadd [#allocation4], 4294967040 }
 0x120   :  { %460 = vsyncpa [#allocation3], 1 }
 0x121   :  { %461 = vsyncpa [#allocation4], 1 }

</bundles_post_ra>
